<compile_context>
chip_gen: v7x
topology: tpu7x:2x2x1
jax: 0.10.0
libtpu: 0.0.40
codegen_flags: <defaults>
</compile_context>

<pallas_src>
import functools

import jax
import jax.numpy as jnp
from jax.experimental import pallas as pl
from jax.experimental.pallas import tpu as pltpu

# Fused head output layout (padded to a full 128-lane vreg width):
#   col 0      -> age (ReLU)
#   cols 1..2  -> gender
#   cols 3..4  -> handedness
#   cols 5..6  -> class
#   cols 7..127-> zero padding (discarded in wrapper)
N_HEAD_OUT = 128
N_HEAD_REAL = 7


def _round_up(n, m):
    return ((n + m - 1) // m) * m


def model2net_kernel(
    x_ref,
    w1_ref, b1_ref,
    w2_ref, b2_ref,
    w3_ref, b3_ref,
    wh_ref, bh_ref,
    out_ref,
):
    x = x_ref[...]

    # Shared trunk (Dropout layers are identity in eval mode).
    h = jnp.maximum(
        jnp.dot(x, w1_ref[...], preferred_element_type=jnp.float32) + b1_ref[...], 0.0
    )
    h = jnp.maximum(
        jnp.dot(h, w2_ref[...], preferred_element_type=jnp.float32) + b2_ref[...], 0.0
    )
    h = jnp.maximum(
        jnp.dot(h, w3_ref[...], preferred_element_type=jnp.float32) + b3_ref[...], 0.0
    )

    # All four heads fused into one lane-dense matmul.
    y = jnp.dot(h, wh_ref[...], preferred_element_type=jnp.float32) + bh_ref[...]

    # ReLU only on the age column (column 0); other heads are plain linear.
    col = jax.lax.broadcasted_iota(jnp.int32, y.shape, 1)
    out_ref[...] = jnp.where(col == 0, jnp.maximum(y, 0.0), y)


@functools.partial(jax.jit, static_argnames=("tm",))
def model2net_forward(x, params, *, tm=512):
    """Runs the fused kernel; returns (age, gender, handedness, class)."""
    w1, b1, w2, b2, w3, b3, wa, ba, wg, bg, wh, bh, wc, bc = params

    B, F_IN = x.shape

    # Fuse + zero-pad head weights/biases to (32, 128) / (1, 128) once, in the
    # wrapper (not per grid step inside the kernel).
    w_heads = jnp.concatenate([wa, wg, wh, wc], axis=1)            # (32, 7)
    b_heads = jnp.concatenate([ba, bg, bh, bc], axis=1)            # (1, 7)
    w_heads = jnp.pad(w_heads, ((0, 0), (0, N_HEAD_OUT - N_HEAD_REAL)))
    b_heads = jnp.pad(b_heads, ((0, 0), (0, N_HEAD_OUT - N_HEAD_REAL)))

    # Batch tile: multiple of 8 sublanes, capped for v7x VMEM safety.
    TM = min(tm, _round_up(B, 8))
    B_pad = _round_up(B, TM)
    if B_pad != B:
        x = jnp.pad(x, ((0, B_pad - B), (0, 0)))
    grid = (B_pad // TM,)

    # Resident full-array blocks for all weights/biases; tiled x and output.
    def full_spec(arr):
        return pl.BlockSpec(arr.shape, lambda i: (0, 0))

    weight_args = (w1, b1, w2, b2, w3, b3, w_heads, b_heads)

    in_specs = [pl.BlockSpec((TM, F_IN), lambda i: (i, 0))]
    in_specs += [full_spec(a) for a in weight_args]
    out_spec = pl.BlockSpec((TM, N_HEAD_OUT), lambda i: (i, 0))

    flops = 2 * B_pad * (20 * 128 + 128 * 64 + 64 * 32 + 32 * N_HEAD_OUT)
    weight_bytes = sum(int(a.size) * 4 for a in weight_args)
    bytes_accessed = B_pad * (F_IN + N_HEAD_OUT) * 4 + weight_bytes
    cost = pl.CostEstimate(
        flops=flops, transcendentals=0, bytes_accessed=bytes_accessed
    )

    out = pl.pallas_call(
        model2net_kernel,
        out_shape=jax.ShapeDtypeStruct((B_pad, N_HEAD_OUT), jnp.float32),
        grid_spec=pltpu.PrefetchScalarGridSpec(
            num_scalar_prefetch=0,
            grid=grid,
            in_specs=in_specs,
            out_specs=out_spec,
        ),
        compiler_params=pltpu.CompilerParams(
            dimension_semantics=("parallel",),
        ),
        cost_estimate=cost,
    )(x, *weight_args)

    age = out[:B, 0:1]
    gender = out[:B, 1:3]
    handedness = out[:B, 3:5]
    class_output = out[:B, 5:7]
    return age, gender, handedness, class_output


def init_params(key):
    """Deterministic parameter init; weights as (in, out), biases as (1, out)."""
    dims = [
        (20, 128),  # shared.0
        (128, 64),  # shared.3
        (64, 32),   # shared.6
        (32, 1),    # age_head
        (32, 2),    # gender_head
        (32, 2),    # handedness_head
        (32, 2),    # class_head
    ]
    params = []
    for (fan_in, fan_out) in dims:
        key, wk, bk = jax.random.split(key, 3)
        bound = 1.0 / jnp.sqrt(float(fan_in))
        w = jax.random.uniform(wk, (fan_in, fan_out), jnp.float32, -bound, bound)
        b = jax.random.uniform(bk, (1, fan_out), jnp.float32, -bound, bound)
        params.append(w)
        params.append(b)
    return tuple(params)


if __name__ == "__main__":
    key = jax.random.PRNGKey(0)
    key, xk, pk = jax.random.split(key, 3)

    batch = 8
    x = jax.random.normal(xk, (batch, 20), dtype=jnp.float32)
    params = init_params(pk)

    age, gender, handedness, class_output = model2net_forward(x, params)
    jax.block_until_ready((age, gender, handedness, class_output))

    # Sanity-check against a pure-JAX reference of the same math.
    def ref_forward(x, p):
        w1, b1, w2, b2, w3, b3, wa, ba, wg, bg, wh, bh, wc, bc = p
        h = jnp.maximum(x @ w1 + b1, 0.0)
        h = jnp.maximum(h @ w2 + b2, 0.0)
        h = jnp.maximum(h @ w3 + b3, 0.0)
        return (
            jnp.maximum(h @ wa + ba, 0.0),
            h @ wg + bg,
            h @ wh + bh,
            h @ wc + bc,
        )

    refs = ref_forward(x, params)
    outs = (age, gender, handedness, class_output)
    for o, r in zip(outs, refs):
        assert o.shape == r.shape, (o.shape, r.shape)
        assert jnp.allclose(o, r, atol=1e-5, rtol=1e-5)

    print("KERNEL_OK")
</pallas_src>

<mosaic_0001>
module attributes {stable_mosaic.version = 11 : i64} {
  func.func @model2net_kernel(%arg0: i32, %arg1: memref<8x20xf32, #tpu.memory_space<vmem>>, %arg2: memref<20x128xf32, #tpu.memory_space<vmem>>, %arg3: memref<1x128xf32, #tpu.memory_space<vmem>>, %arg4: memref<128x64xf32, #tpu.memory_space<vmem>>, %arg5: memref<1x64xf32, #tpu.memory_space<vmem>>, %arg6: memref<64x32xf32, #tpu.memory_space<vmem>>, %arg7: memref<1x32xf32, #tpu.memory_space<vmem>>, %arg8: memref<32x128xf32, #tpu.memory_space<vmem>>, %arg9: memref<1x128xf32, #tpu.memory_space<vmem>>, %arg10: memref<8x128xf32, #tpu.memory_space<vmem>>) attributes {dimension_semantics = [#tpu.dimension_semantics<parallel>], iteration_bounds = array<i64: 1>, scalar_prefetch = 0 : i64, scratch_operands = 0 : i64, tpu.core_type = #tpu.core_type<tc>, window_params = [{transform_indices = @transform_0, window_bounds = array<i64: 8, 20>}, {pipeline_mode = #tpu.pipeline_mode<synchronous>, transform_indices = @transform_1, window_bounds = array<i64: 20, 128>}, {pipeline_mode = #tpu.pipeline_mode<synchronous>, transform_indices = @transform_2, window_bounds = array<i64: 1, 128>}, {pipeline_mode = #tpu.pipeline_mode<synchronous>, transform_indices = @transform_3, window_bounds = array<i64: 128, 64>}, {pipeline_mode = #tpu.pipeline_mode<synchronous>, transform_indices = @transform_4, window_bounds = array<i64: 1, 64>}, {pipeline_mode = #tpu.pipeline_mode<synchronous>, transform_indices = @transform_5, window_bounds = array<i64: 64, 32>}, {pipeline_mode = #tpu.pipeline_mode<synchronous>, transform_indices = @transform_6, window_bounds = array<i64: 1, 32>}, {pipeline_mode = #tpu.pipeline_mode<synchronous>, transform_indices = @transform_7, window_bounds = array<i64: 32, 128>}, {pipeline_mode = #tpu.pipeline_mode<synchronous>, transform_indices = @transform_8, window_bounds = array<i64: 1, 128>}, {transform_indices = @transform_9, window_bounds = array<i64: 8, 128>}]} {
    %c0 = arith.constant 0 : index
    %c0_0 = arith.constant 0 : index
    %0 = vector.load %arg1[%c0, %c0_0] : memref<8x20xf32, #tpu.memory_space<vmem>>, vector<8x20xf32>
    %c0_1 = arith.constant 0 : index
    %c0_2 = arith.constant 0 : index
    %1 = vector.load %arg2[%c0_1, %c0_2] : memref<20x128xf32, #tpu.memory_space<vmem>>, vector<20x128xf32>
    %cst = arith.constant dense<0.000000e+00> : vector<8x128xf32>
    %2 = tpu.matmul %0, %1, %cst {dimension_numbers = #tpu.dot_dimension_numbers<[1], [0], [0], [1], [0, 0, 1, 1], [], []>} : vector<8x20xf32>, vector<20x128xf32>, vector<8x128xf32> -> vector<8x128xf32>
    %c0_3 = arith.constant 0 : index
    %c0_4 = arith.constant 0 : index
    %3 = vector.load %arg3[%c0_3, %c0_4] : memref<1x128xf32, #tpu.memory_space<vmem>>, vector<1x128xf32>
    %4 = vector.broadcast %3 : vector<1x128xf32> to vector<8x128xf32>
    %5 = arith.addf %2, %4 : vector<8x128xf32>
    %cst_5 = arith.constant 0.000000e+00 : f32
    %6 = vector.broadcast %cst_5 : f32 to vector<8x128xf32>
    %7 = arith.maximumf %5, %6 : vector<8x128xf32>
    %c0_6 = arith.constant 0 : index
    %c0_7 = arith.constant 0 : index
    %8 = vector.load %arg4[%c0_6, %c0_7] : memref<128x64xf32, #tpu.memory_space<vmem>>, vector<128x64xf32>
    %cst_8 = arith.constant dense<0.000000e+00> : vector<8x64xf32>
    %9 = tpu.matmul %7, %8, %cst_8 {dimension_numbers = #tpu.dot_dimension_numbers<[1], [0], [0], [1], [0, 0, 1, 1], [], []>} : vector<8x128xf32>, vector<128x64xf32>, vector<8x64xf32> -> vector<8x64xf32>
    %c0_9 = arith.constant 0 : index
    %c0_10 = arith.constant 0 : index
    %10 = vector.load %arg5[%c0_9, %c0_10] : memref<1x64xf32, #tpu.memory_space<vmem>>, vector<1x64xf32>
    %11 = vector.broadcast %10 : vector<1x64xf32> to vector<8x64xf32>
    %12 = arith.addf %9, %11 : vector<8x64xf32>
    %cst_11 = arith.constant 0.000000e+00 : f32
    %13 = vector.broadcast %cst_11 : f32 to vector<8x64xf32>
    %14 = arith.maximumf %12, %13 : vector<8x64xf32>
    %c0_12 = arith.constant 0 : index
    %c0_13 = arith.constant 0 : index
    %15 = vector.load %arg6[%c0_12, %c0_13] : memref<64x32xf32, #tpu.memory_space<vmem>>, vector<64x32xf32>
    %cst_14 = arith.constant dense<0.000000e+00> : vector<8x32xf32>
    %16 = tpu.matmul %14, %15, %cst_14 {dimension_numbers = #tpu.dot_dimension_numbers<[1], [0], [0], [1], [0, 0, 1, 1], [], []>} : vector<8x64xf32>, vector<64x32xf32>, vector<8x32xf32> -> vector<8x32xf32>
    %c0_15 = arith.constant 0 : index
    %c0_16 = arith.constant 0 : index
    %17 = vector.load %arg7[%c0_15, %c0_16] : memref<1x32xf32, #tpu.memory_space<vmem>>, vector<1x32xf32>
    %18 = vector.broadcast %17 : vector<1x32xf32> to vector<8x32xf32>
    %19 = arith.addf %16, %18 : vector<8x32xf32>
    %cst_17 = arith.constant 0.000000e+00 : f32
    %20 = vector.broadcast %cst_17 : f32 to vector<8x32xf32>
    %21 = arith.maximumf %19, %20 : vector<8x32xf32>
    %c0_18 = arith.constant 0 : index
    %c0_19 = arith.constant 0 : index
    %22 = vector.load %arg8[%c0_18, %c0_19] : memref<32x128xf32, #tpu.memory_space<vmem>>, vector<32x128xf32>
    %cst_20 = arith.constant dense<0.000000e+00> : vector<8x128xf32>
    %23 = tpu.matmul %21, %22, %cst_20 {dimension_numbers = #tpu.dot_dimension_numbers<[1], [0], [0], [1], [0, 0, 1, 1], [], []>} : vector<8x32xf32>, vector<32x128xf32>, vector<8x128xf32> -> vector<8x128xf32>
    %c0_21 = arith.constant 0 : index
    %c0_22 = arith.constant 0 : index
    %24 = vector.load %arg9[%c0_21, %c0_22] : memref<1x128xf32, #tpu.memory_space<vmem>>, vector<1x128xf32>
    %25 = vector.broadcast %24 : vector<1x128xf32> to vector<8x128xf32>
    %26 = arith.addf %23, %25 : vector<8x128xf32>
    %27 = tpu.iota {dimensions = array<i32: 1>} : vector<8x128xi32>
    %c0_i32 = arith.constant 0 : i32
    %28 = vector.broadcast %c0_i32 : i32 to vector<8x128xi32>
    %29 = arith.cmpi eq, %27, %28 : vector<8x128xi32>
    %cst_23 = arith.constant 0.000000e+00 : f32
    %30 = vector.broadcast %cst_23 : f32 to vector<8x128xf32>
    %31 = arith.maximumf %26, %30 : vector<8x128xf32>
    %32 = arith.select %29, %31, %26 : vector<8x128xi1>, vector<8x128xf32>
    %c0_24 = arith.constant 0 : index
    %c0_25 = arith.constant 0 : index
    %33 = vector.load %arg10[%c0_24, %c0_25] : memref<8x128xf32, #tpu.memory_space<vmem>>, vector<8x128xf32>
    tpu.vector_store %arg10[%c0_24, %c0_25], %32 {strides = array<i32>} : memref<8x128xf32, #tpu.memory_space<vmem>>, vector<8x128xf32>,
    return
  }
  func.func @transform_0(%arg0: i32) -> (i32, i32) {
    %c0_i32 = arith.constant 0 : i32
    %c0_i32_0 = arith.constant 0 : i32
    return %arg0, %c0_i32 : i32, i32
  }
  func.func @transform_1(%arg0: i32) -> (i32, i32) {
    %c0_i32 = arith.constant 0 : i32
    %c0_i32_0 = arith.constant 0 : i32
    %c0_i32_1 = arith.constant 0 : i32
    return %c0_i32, %c0_i32_0 : i32, i32
  }
  func.func @transform_2(%arg0: i32) -> (i32, i32) {
    %c0_i32 = arith.constant 0 : i32
    %c0_i32_0 = arith.constant 0 : i32
    %c0_i32_1 = arith.constant 0 : i32
    return %c0_i32, %c0_i32_0 : i32, i32
  }
  func.func @transform_3(%arg0: i32) -> (i32, i32) {
    %c0_i32 = arith.constant 0 : i32
    %c0_i32_0 = arith.constant 0 : i32
    %c0_i32_1 = arith.constant 0 : i32
    return %c0_i32, %c0_i32_0 : i32, i32
  }
  func.func @transform_4(%arg0: i32) -> (i32, i32) {
    %c0_i32 = arith.constant 0 : i32
    %c0_i32_0 = arith.constant 0 : i32
    %c0_i32_1 = arith.constant 0 : i32
    return %c0_i32, %c0_i32_0 : i32, i32
  }
  func.func @transform_5(%arg0: i32) -> (i32, i32) {
    %c0_i32 = arith.constant 0 : i32
    %c0_i32_0 = arith.constant 0 : i32
    %c0_i32_1 = arith.constant 0 : i32
    return %c0_i32, %c0_i32_0 : i32, i32
  }
  func.func @transform_6(%arg0: i32) -> (i32, i32) {
    %c0_i32 = arith.constant 0 : i32
    %c0_i32_0 = arith.constant 0 : i32
    %c0_i32_1 = arith.constant 0 : i32
    return %c0_i32, %c0_i32_0 : i32, i32
  }
  func.func @transform_7(%arg0: i32) -> (i32, i32) {
    %c0_i32 = arith.constant 0 : i32
    %c0_i32_0 = arith.constant 0 : i32
    %c0_i32_1 = arith.constant 0 : i32
    return %c0_i32, %c0_i32_0 : i32, i32
  }
  func.func @transform_8(%arg0: i32) -> (i32, i32) {
    %c0_i32 = arith.constant 0 : i32
    %c0_i32_0 = arith.constant 0 : i32
    %c0_i32_1 = arith.constant 0 : i32
    return %c0_i32, %c0_i32_0 : i32, i32
  }
  func.func @transform_9(%arg0: i32) -> (i32, i32) {
    %c0_i32 = arith.constant 0 : i32
    %c0_i32_0 = arith.constant 0 : i32
    return %arg0, %c0_i32 : i32, i32
  }
}

</mosaic_0001>

<bundles_post_ra>
// kernel: model2net_forward.1
= control target key start
LH: loop header
LB: loop body
LE: loop exit
PB: predicated region body
PF: predicated region fallthrough
CT: control target
= control target key end

     0   :  { %v566_v0 = vmov 0.0|0.0   ;;  %vm567_vm0 = vmmov 0   ;;  %v568_v3 = vmov 0.0   ;;  %vm47_vm1 = vcmask 1043456   ;;  %s754_s1 = inlined_call_operand.vmem [shape: f32[20,128], index: 1, kind: input, shape index: {}]   ;;  %s755_s3 = inlined_call_operand.vmem [shape: f32[128,64], index: 3, kind: input, shape index: {}]   ;;  %s756_s0 = inlined_call_operand.vmem [shape: f32[8,20], index: 0, kind: input, shape index: {}]   ;;  %s757_s5 = inlined_call_operand.vmem [shape: f32[64,32], index: 5, kind: input, shape index: {}]   ;;  %s758_s2 = inlined_call_operand.vmem [shape: f32[1,128], index: 2, kind: input, shape index: {}]   ;;  %s759_s4 = inlined_call_operand.vmem [shape: f32[1,64], index: 4, kind: input, shape index: {}]   ;;  %s760_s7 = inlined_call_operand.vmem [shape: f32[32,128], index: 7, kind: input, shape index: {}]   ;;  %s761_s6 = inlined_call_operand.vmem [shape: f32[1,32], index: 6, kind: input, shape index: {}]   ;;  %s762_s8 = inlined_call_operand.vmem [shape: f32[1,128], index: 8, kind: input, shape index: {}]   ;;  %s763_s9 = inlined_call_operand.vmem [shape: f32[8,128], index: 9, kind: output, shape index: {}]  }
   0x1   :  { %518 = vmatprep.subr.bf16.mxu0 %v566_v0  ;;  %v33_v1 = vld [vmem:[%s754_s1] sm:$0xff]  ;;  %v34_v2 = vld [vmem:[%s754_s1 + $0x8] sm:$0xff]  ;;  %450 = vmatprep.mubr.msk.f32.mxu0 %vm567_vm0, %v568_v3  ;;  %v124_v8 = vld [vmem:[%s755_s3 + $0x10] sm:$0xff]  ;;  %vm43_vm2 = vcmask 162816   ;;  %vm231_vm3 = vcmask 523264   ;;  %vm317_vm4 = vcmask 261120  }
   0x2   :  { %v519_v4 = vpack.c.bf16 %v34_v2, %v33_v1  ;;  %521 = vmatprep.subr.bf16.mxu1 %v566_v0  ;;  %v122_v5 = vld [vmem:[%s755_s3] sm:$0xff]  ;;  %v123_v6 = vld [vmem:[%s755_s3 + $0x8] sm:$0xff]  ;;  %485 = vmatprep.mubr.msk.f32.mxu1 %vm567_vm0, %v568_v3  ;;  %v125_v9 = vld [vmem:[%s755_s3 + $0x18] sm:$0xff] }
   0x3   :  { %v522_v7 = vpack.c.bf16 %v123_v6, %v122_v5  ;;  %v35_v10 = vld [vmem:[%s754_s1 + $0x10] sm:$0xf]  ;;  %v525_v11 = vpack.c.bf16 %v125_v9, %v124_v8  ;;  %v32_v12 = vld [vmem:[%s756_s0] sm:$0xff]  ;;  %v127_v14 = vld [vmem:[%s755_s3 + $0x28] sm:$0xff] }
   0x4   :  { %520 = vmatpush3.bf16.msra.mxu0 %v519_v4  ;;  %v126_v13 = vld [vmem:[%s755_s3 + $0x20] sm:$0xff]  ;;  %v128_v16 = vld [vmem:[%s755_s3 + $0x30] sm:$0xff]  ;;  %v129_v17 = vld [vmem:[%s755_s3 + $0x38] sm:$0xff] }
   0x5   :  { %448 = vmatprep.subr.mxu0 %v568_v3  ;;  %523 = vmatpush3.bf16.msra.mxu1 %v522_v7  ;;  %v528_v15 = vpack.c.bf16 %v127_v14, %v126_v13  ;;  %v531_v18 = vpack.c.bf16 %v129_v17, %v128_v16  ;;  %v130_v19 = vld [vmem:[%s755_s3 + $0x40] sm:$0xff]  ;;  %v131_v20 = vld [vmem:[%s755_s3 + $0x48] sm:$0xff]  ;;  %v132_v22 = vld [vmem:[%s755_s3 + $0x50] sm:$0xff] }
   0x6   :  { %524 = vmatprep.subr.bf16.mxu1 %v566_v0  ;;  %v534_v21 = vpack.c.bf16 %v131_v20, %v130_v19  ;;  %v133_v23 = vld [vmem:[%s755_s3 + $0x58] sm:$0xff]  ;;  %v134_v25 = vld [vmem:[%s755_s3 + $0x60] sm:$0xff]  ;;  %v135_v26 = vld [vmem:[%s755_s3 + $0x68] sm:$0xff] }
   0x7   :  { %v537_v24 = vpack.c.bf16 %v133_v23, %v132_v22  ;;  %v540_v27 = vpack.c.bf16 %v135_v26, %v134_v25  ;;  %v136_v28 = vld [vmem:[%s755_s3 + $0x70] sm:$0xff]  ;;  %v137_v29 = vld [vmem:[%s755_s3 + $0x78] sm:$0xff]  ;;  %v216_v31 = vld [vmem:[%s757_s5] sm:$0xff] }
   0x8   :  { %449 = vmatpush3.msk.msra.mxu0 %vm47_vm1, %v35_v10  ;;  %v543_v30 = vpack.c.bf16 %v137_v29, %v136_v28  ;;  %v217_v32 = vld [vmem:[%s757_s5 + $0x8] sm:$0xff]  ;;  %v218_v33 = vld [vmem:[%s757_s5 + $0x10] sm:$0xff]  ;;  %v219_v35 = vld [vmem:[%s757_s5 + $0x18] sm:$0xff] }
   0x9   :  { %451 = vmatmul.mubr.msk.f32.vlgmr.msra.gmra.mrb[0].mxu0 %vm43_vm2, %v32_v12  ;;  %526 = vmatpush3.bf16.msra.mxu1 %v525_v11  ;;  %v546_v34 = vpack.c.bf16 %v217_v32, %v216_v31  ;;  %v549_v36 = vpack.c.bf16 %v219_v35, %v218_v33  ;;  %v220_v37 = vld [vmem:[%s757_s5 + $0x20] sm:$0xff]  ;;  %v221_v38 = vld [vmem:[%s757_s5 + $0x28] sm:$0xff]  ;;  %v222_v45 = vld [vmem:[%s757_s5 + $0x30] sm:$0xff] }
   0xa   :  { %527 = vmatprep.subr.bf16.mxu1 %v566_v0  ;;  %545 = vmatprep.subr.bf16.mxu0 %v566_v0  ;;  %v552_v39 = vpack.c.bf16 %v221_v38, %v220_v37  ;;  %v401_v40 = vld [vmem:[%s758_s2] ss:$0 sm:$0xff]  ;;  %v223_v46 = vld [vmem:[%s757_s5 + $0x38] sm:$0xff]  ;;  %v307_v50 = vld [vmem:[%s760_s7 + $0x8] sm:$0xff] }
   0xb   :  { %504 = vmatprep.mubr.msk.f32.mxu0 %vm567_vm0, %v568_v3  ;;  %547 = vmatpush3.bf16.msra.mxu0 %v546_v34  ;;  %v555_v47 = vpack.c.bf16 %v223_v46, %v222_v45  ;;  %v404_v48 = vld [vmem:[%s759_s4] ss:$0 sm:$0xff]  ;;  %v308_v56 = vld [vmem:[%s760_s7 + $0x10] sm:$0xff]  ;;  %v309_v57 = vld [vmem:[%s760_s7 + $0x18] sm:$0xff] }
   0xc   :  { %548 = vmatprep.subr.bf16.mxu0 %v566_v0  ;;  %v306_v49 = vld [vmem:[%s760_s7] sm:$0xff]  ;;  %v561_v58 = vpack.c.bf16 %v309_v57, %v308_v56 }
   0xd   :  { %529 = vmatpush3.bf16.msra.mxu1 %v528_v15  ;;  %v558_v54 = vpack.c.bf16 %v307_v50, %v306_v49  ;;  %v405_v59 = vld [vmem:[%s761_s6] ss:$0 sm:$0xff] }
   0xe   :  { %530 = vmatprep.subr.bf16.mxu1 %v566_v0  ;;  %v407_v1 = vld [vmem:[%s762_s8] ss:$0 sm:$0xff] }
   0xf   :  { %550 = vmatpush3.bf16.msra.mxu0 %v549_v36 }
  0x10   :  { %551 = vmatprep.subr.bf16.mxu0 %v566_v0 }
  0x11   :  { %532 = vmatpush3.bf16.msra.mxu1 %v531_v18 }
  0x12   :  { %533 = vmatprep.subr.bf16.mxu1 %v566_v0 }
  0x13   :  { %553 = vmatpush3.bf16.msra.mxu0 %v552_v39 }
  0x14   :  { %554 = vmatprep.subr.bf16.mxu0 %v566_v0 }
  0x15   :  { %535 = vmatpush3.bf16.msra.mxu1 %v534_v21 }
  0x16   :  { %536 = vmatprep.subr.bf16.mxu1 %v566_v0 }
  0x17   :  { %556 = vmatpush3.bf16.msra.mxu0 %v555_v47 }
  0x18   :  { %557 = vmatprep.subr.bf16.mxu0 %v566_v0 }
  0x19   :  { %538 = vmatpush3.bf16.msra.mxu1 %v537_v24 }
  0x1a   :  { %539 = vmatprep.subr.bf16.mxu1 %v566_v0 }
  0x1d   :  { %541 = vmatpush3.bf16.msra.mxu1 %v540_v27 }
  0x1e   :  { %542 = vmatprep.subr.bf16.mxu1 %v566_v0 }
  0x21   :  { %544 = vmatpush3.bf16.msra.mxu1 %v543_v30 }
  0xdc   :  { %v117_v41 = vpop.f32.mrb[0].mxu0 }
  0xdd   :  { %v118_v42 = vadd.f32 %v401_v40, %v117_v41  ;;  %v452_v43 = vpop.f32.mrb[1].mxu0 }
  0xdf   :  { %v121_v44 = vmax.f32 %v118_v42, 0.0 }
  0xe1   :  { %486 = vmatmul.mubr.f32.vlgmr.msra.gmra.mrb[0].mxu1 %v121_v44 }
 0x1b4   :  { %v211_v51 = vpop.f32.mrb[0].mxu1 }
 0x1b5   :  { %v212_v52 = vadd.f32 %v404_v48, %v211_v51  ;;  %v487_v53 = vpop.f32.mrb[1].mxu1 }
 0x1b7   :  { %v215_v55 = vmax.f32 %v212_v52, 0.0 }
 0x1b9   :  { %505 = vmatmul.mubr.msk.f32.vlgmr.msra.gmra.mrb[2].mxu0 %vm231_vm3, %v215_v55 }
 0x1ba   :  { %559 = vmatpush3.bf16.msra.mxu0 %v558_v54  ;;  %515 = vmatprep.mubr.msk.f32.mxu0 %vm567_vm0, %v568_v3 }
 0x1bb   :  { %560 = vmatprep.subr.bf16.mxu0 %v566_v0  ;;  %v391_v0 = vlaneseq }
 0x1bd   :  { %v392_v2 = vand.u32 127, %v391_v0 }
 0x1be   :  { %562 = vmatpush3.bf16.msra.mxu0 %v561_v58 }
 0x1bf   :  { %vm393_vm5 = vcmp.eq.s32.totalorder %v392_v2, 0 }
 0x28c   :  { %v301_v60 = vpop.f32.mrb[2].mxu0 }
 0x28d   :  { %v302_v61 = vadd.f32 %v405_v59, %v301_v60  ;;  %v506_v62 = vpop.f32.mrb[3].mxu0 }
 0x28f   :  { %v305_v63 = vmax.f32 %v302_v61, 0.0 }
 0x291   :  { %516 = vmatmul.mubr.msk.f32.vlgmr.msra.gmra.mrb[4].mxu0 %vm317_vm4, %v305_v63 }
 0x364   :  { %v387_v3 = vpop.f32.mrb[4].mxu0 }
 0x365   :  { %v388_v4 = vadd.f32 %v407_v1, %v387_v3  ;;  %v517_v5 = vpop.f32.mrb[5].mxu0 }
 0x367   :  { %v394_v6 = vmax.f32 %v388_v4, 0.0 }
 0x369   :  { %v395_v7 = vsel %vm393_vm5, %v394_v6, %v388_v4 }
 0x36a   :  { %396 = vst [vmem:[%s763_s9] sm:$0xff] %v395_v7 }

</bundles_post_ra>
